<compile_context>
chip_gen: v7x
topology: tpu7x:2x2x1
jax: 0.10.0
libtpu: 0.0.40
codegen_flags: <defaults>
</compile_context>

<pallas_src>
import functools
import math

import jax
import jax.numpy as jnp
from jax import lax
from jax.experimental import pallas as pl
from jax.experimental.pallas import tpu as pltpu

_INV_SQRT2 = 1.0 / math.sqrt(2.0)
_SQRT_2_OVER_PI = math.sqrt(2.0 / math.pi)


def _gelu_f32(h, approximate):
    """GELU in f32.  Exact erf form matches torch.nn.GELU() default."""
    if approximate:
        # tanh approximation -> transcendental goes to the EUP slot (useful
        # when the VALU is the binding unit on v6e/v7x).  Not bit-identical
        # to torch's default erf GELU.
        inner = _SQRT_2_OVER_PI * (h + 0.044715 * (h * h * h))
        return 0.5 * h * (1.0 + jnp.tanh(inner))
    return 0.5 * h * (1.0 + lax.erf(h * _INV_SQRT2))


def _mlp_kernel(x_ref, w1_ref, b1_ref, w2_ref, b2_ref, o_ref, *,
                compute_dtype, approximate_gelu):
    # x_ref:  (TM, D_in)      w1_ref: (D_in, D_hid)   b1_ref: (1, D_hid) f32
    # w2_ref: (D_hid, D_out)  b2_ref: (1, D_out) f32  o_ref:  (TM, D_out)
    # In-kernel cast of x rides a free VPU slot under the MXU work.
    x = x_ref[...].astype(compute_dtype)
    h = jnp.dot(x, w1_ref[...], preferred_element_type=jnp.float32) + b1_ref[...]
    h = _gelu_f32(h, approximate_gelu)
    y = jnp.dot(h.astype(compute_dtype), w2_ref[...],
                preferred_element_type=jnp.float32) + b2_ref[...]
    o_ref[...] = y.astype(o_ref.dtype)


def _mlp_kernel_hidden_chunked(x_ref, w1_ref, b1_ref, w2_ref, b2_ref, o_ref,
                               acc_ref, *, compute_dtype, approximate_gelu):
    # Grid = (M tiles, D_hid chunks).  acc_ref: (TM, D_out) f32 scratch.
    k = pl.program_id(1)

    @pl.when(k == 0)
    def _():
        acc_ref[...] = jnp.zeros_like(acc_ref)

    x = x_ref[...].astype(compute_dtype)
    h = jnp.dot(x, w1_ref[...], preferred_element_type=jnp.float32) + b1_ref[...]
    h = _gelu_f32(h, approximate_gelu)
    acc_ref[...] += jnp.dot(h.astype(compute_dtype), w2_ref[...],
                            preferred_element_type=jnp.float32)

    @pl.when(k == pl.num_programs(1) - 1)
    def _():
        o_ref[...] = (acc_ref[...] + b2_ref[...]).astype(o_ref.dtype)


def _physical_vmem_bytes():
    try:
        return int(pltpu.get_tpu_info().vmem_capacity_bytes)
    except Exception:
        return 64 * 1024 * 1024   # conservative: v7x per-TensorCore budget


def _round_up(x, m):
    return -(-x // m) * m


def _choose_tiles(M, D_in, D_hid, D_out, x_isz, out_isz, c_isz, vmem_budget,
                  hidden_block=None):
    """Pick (TM, TK_hid) under a per-TensorCore VMEM budget."""

    def per_step_bytes(tm, tk, resident):
        if resident:
            w = (D_in * D_hid + D_hid * D_out) * c_isz      # Buffered(1)
            acc = 0
        else:
            w = 2 * (D_in * tk + tk * D_out) * c_isz        # double-buffered
            acc = tm * D_out * 4
        io = 2 * tm * D_in * x_isz + 2 * tm * D_out * out_isz
        work = tm * D_in * c_isz + tm * tk * (4 + c_isz) + tm * D_out * 4
        bias = 4 * (D_hid + D_out)
        return int(1.15 * (w + acc + io + work + bias))

    # --- hidden (K) chunk: keep weights resident whenever they fit. ---
    if hidden_block is not None:
        tk = int(hidden_block)
    elif per_step_bytes(128, D_hid, True) <= vmem_budget:
        tk = D_hid
    else:
        tk = None
        for cand in (2048, 1024, 512, 256, 128):
            if D_hid % cand == 0 and per_step_bytes(128, cand, False) <= vmem_budget:
                tk = cand
                break
        if tk is None:
            # TODO(synk): pad D_hid to a 128 multiple for weights that are both
            # huge and not 128-divisible; until then keep weights resident.
            tk = D_hid
    resident = (tk == D_hid)

    # --- row (M) tile ---
    if M <= 256:
        # One full-size (possibly ragged) step beats several tiny ones; keep at
        # least 16 rows (bf16 min sublane tile, avoids masked sublane layouts).
        tm = max(16, _round_up(M, 16))
        while tm > 16 and per_step_bytes(tm, tk, resident) > vmem_budget:
            tm //= 2
        return tm, tk

    tm = 128
    for cand in (1024, 512, 256, 128):
        if per_step_bytes(cand, tk, resident) <= vmem_budget and M >= 2 * cand:
            tm = cand
            break
    return tm, tk


def mlp_pallas(x, w1, b1, w2, b2, *, compute_dtype=jnp.bfloat16, tile_m=None,
               hidden_block=None, approximate_gelu=False):
    """y = fc2(GELU(fc1(x))).

    x: (..., D_in); w1: (D_in, D_hid); b1: (D_hid,); w2: (D_hid, D_out);
    b2: (D_out,).  Returns (..., D_out) in x.dtype.

    compute_dtype: MXU feed dtype.  bf16 (default) is the production path;
    float32 is a parity/test-only path (multi-pass MXU, ~4-8x slower matmuls).
    """
    orig_shape = x.shape
    D_in = orig_shape[-1]
    D_hid = w1.shape[1]
    D_out = w2.shape[1]
    M = math.prod(orig_shape[:-1])
    out_dtype = x.dtype

    # No pad / cast / slice passes over x or the output in HBM: the grid is
    # cdiv(M, TM) and Pallas masks the ragged last tile (safe: row-wise MLP,
    # out-of-bounds rows are never stored).  x is cast in-kernel.
    x2d = x.reshape(M, D_in)

    # One-time weight cast keeps the resident VMEM copies at compute_dtype
    # width; biases stay f32 for the f32 accumulate + GELU.
    w1c = w1.astype(compute_dtype)
    w2c = w2.astype(compute_dtype)
    b1_2d = b1.reshape(1, D_hid).astype(jnp.float32)
    b2_2d = b2.reshape(1, D_out).astype(jnp.float32)

    # Per-generation VMEM limit: ~96 MiB on 128 MiB chips (v5e/v6e), 48 MiB on
    # v7x (64 MiB per TensorCore).  Budget the tiles inside ~90% of that.
    phys_vmem = _physical_vmem_bytes()
    vmem_limit = min(3 * phys_vmem // 4, 100 * 1024 * 1024)
    vmem_budget = int(0.9 * vmem_limit)

    c_isz = jnp.dtype(compute_dtype).itemsize
    x_isz = jnp.dtype(x2d.dtype).itemsize
    o_isz = jnp.dtype(out_dtype).itemsize
    TM, TK = _choose_tiles(M, D_in, D_hid, D_out, x_isz, o_isz, c_isz,
                           vmem_budget, hidden_block=hidden_block)
    if tile_m is not None:
        TM = tile_m

    n_m = pl.cdiv(M, TM)
    n_k = pl.cdiv(D_hid, TK)
    if n_k > 1:
        # Ragged hidden chunks would feed garbage into the reduction.
        assert D_hid % TK == 0, "hidden_block must divide hidden_features"

    cost = pl.CostEstimate(
        flops=2 * M * (D_in * D_hid + D_hid * D_out),
        transcendentals=M * D_hid,
        bytes_accessed=(M * D_in * x_isz
                        + (D_in * D_hid + D_hid * D_out) * c_isz
                        + 4 * (D_hid + D_out)
                        + M * D_out * o_isz),
    )
    compiler_params_1d = pltpu.CompilerParams(
        dimension_semantics=("parallel",),
        vmem_limit_bytes=vmem_limit,
    )
    out_shape = jax.ShapeDtypeStruct((M, D_out), out_dtype)

    if n_k == 1:
        kernel = functools.partial(_mlp_kernel, compute_dtype=compute_dtype,
                                   approximate_gelu=approximate_gelu)

        def run(buffered):
            def resident(shape):
                if buffered:
                    return pl.BlockSpec(shape, lambda i: (0, 0),
                                        pipeline_mode=pl.Buffered(1))
                return pl.BlockSpec(shape, lambda i: (0, 0))

            return pl.pallas_call(
                kernel,
                out_shape=out_shape,
                grid_spec=pltpu.PrefetchScalarGridSpec(
                    num_scalar_prefetch=0,
                    grid=(n_m,),
                    in_specs=[
                        pl.BlockSpec((TM, D_in), lambda i: (i, 0)),  # x tiles
                        resident((D_in, D_hid)),                     # w1
                        resident((1, D_hid)),                        # b1
                        resident((D_hid, D_out)),                    # w2
                        resident((1, D_out)),                        # b2
                    ],
                    out_specs=pl.BlockSpec((TM, D_out), lambda i: (i, 0)),
                ),
                compiler_params=compiler_params_1d,
                cost_estimate=cost,
            )(x2d, w1c, b1_2d, w2c, b2_2d)

        try:
            # Single-buffer the resident operands (constant index_map -> one
            # fetch); halves their VMEM footprint.
            out2d = run(True)
        except Exception:
            # pl.Buffered(1) is only a perf hint; fall back if unsupported.
            out2d = run(False)
    else:
        kernel = functools.partial(_mlp_kernel_hidden_chunked,
                                   compute_dtype=compute_dtype,
                                   approximate_gelu=approximate_gelu)
        out2d = pl.pallas_call(
            kernel,
            out_shape=out_shape,
            grid_spec=pltpu.PrefetchScalarGridSpec(
                num_scalar_prefetch=0,
                grid=(n_m, n_k),
                in_specs=[
                    pl.BlockSpec((TM, D_in), lambda i, k: (i, 0)),   # x tile
                    pl.BlockSpec((D_in, TK), lambda i, k: (0, k)),   # w1 chunk
                    pl.BlockSpec((1, TK), lambda i, k: (0, k)),      # b1 chunk
                    pl.BlockSpec((TK, D_out), lambda i, k: (k, 0)),  # w2 chunk
                    pl.BlockSpec((1, D_out), lambda i, k: (0, 0)),   # b2
                ],
                out_specs=pl.BlockSpec((TM, D_out), lambda i, k: (i, 0)),
                scratch_shapes=[pltpu.VMEM((TM, D_out), jnp.float32)],
            ),
            compiler_params=pltpu.CompilerParams(
                dimension_semantics=("parallel", "arbitrary"),
                vmem_limit_bytes=vmem_limit,
            ),
            cost_estimate=cost,
        )(x2d, w1c, b1_2d, w2c, b2_2d)

    return out2d.reshape(*orig_shape[:-1], D_out)


def mlp_reference(x, w1, b1, w2, b2):
    """Pure-JAX reference matching torch semantics (exact-erf GELU, f32)."""
    h = jnp.einsum("...d,dh->...h", x, w1) + b1
    h = 0.5 * h * (1.0 + lax.erf(h / jnp.sqrt(2.0)))
    return jnp.einsum("...h,ho->...o", h, w2) + b2


if __name__ == "__main__":
    # Small shapes consistent with the module (token/channel MLP on (B, S, D)).
    B, S = 2, 8
    in_features = 32
    hidden_features = 64
    out_features = 32   # out_features defaults to in_features in the module

    key = jax.random.PRNGKey(0)
    kx, kw1, kb1, kw2, kb2 = jax.random.split(key, 5)

    x = jax.random.normal(kx, (B, S, in_features), dtype=jnp.float32)

    bound1 = 1.0 / math.sqrt(in_features)
    w1 = jax.random.uniform(kw1, (in_features, hidden_features),
                            minval=-bound1, maxval=bound1, dtype=jnp.float32)
    b1 = jax.random.uniform(kb1, (hidden_features,),
                            minval=-bound1, maxval=bound1, dtype=jnp.float32)
    bound2 = 1.0 / math.sqrt(hidden_features)
    w2 = jax.random.uniform(kw2, (hidden_features, out_features),
                            minval=-bound2, maxval=bound2, dtype=jnp.float32)
    b2 = jax.random.uniform(kb2, (out_features,),
                            minval=-bound2, maxval=bound2, dtype=jnp.float32)

    ref = mlp_reference(x, w1, b1, w2, b2)

    # Parity/test-only path: f32 MXU feeds (bitwise semantics of the module).
    out_f32 = jax.block_until_ready(
        mlp_pallas(x, w1, b1, w2, b2, compute_dtype=jnp.float32))
    assert out_f32.shape == (B, S, out_features)
    assert jnp.allclose(out_f32, ref, atol=1e-5, rtol=1e-5), "f32 path mismatch"

    # Production path: bf16 MXU feeds, f32 accumulation + f32 exact-erf GELU.
    out_bf16 = jax.block_until_ready(mlp_pallas(x, w1, b1, w2, b2))
    assert out_bf16.shape == (B, S, out_features)
    assert jnp.allclose(out_bf16, ref, atol=3e-2, rtol=3e-2), "bf16 path mismatch"

    # Ragged-M check: M not a multiple of the tile -> Pallas masks the last tile.
    x_rag = jax.random.normal(kx, (B, 7, in_features), dtype=jnp.float32)
    out_rag = jax.block_until_ready(mlp_pallas(x_rag, w1, b1, w2, b2))
    assert jnp.allclose(out_rag, mlp_reference(x_rag, w1, b1, w2, b2),
                        atol=3e-2, rtol=3e-2), "ragged-M path mismatch"

    # Hidden-dim-chunked (accumulator) path, forced via hidden_block.
    hid2 = 256
    kw3, kb3, kw4, kb4 = jax.random.split(jax.random.PRNGKey(1), 4)
    b3a = 1.0 / math.sqrt(in_features)
    w3 = jax.random.uniform(kw3, (in_features, hid2),
                            minval=-b3a, maxval=b3a, dtype=jnp.float32)
    b3 = jax.random.uniform(kb3, (hid2,),
                            minval=-b3a, maxval=b3a, dtype=jnp.float32)
    b4a = 1.0 / math.sqrt(hid2)
    w4 = jax.random.uniform(kw4, (hid2, out_features),
                            minval=-b4a, maxval=b4a, dtype=jnp.float32)
    b4 = jax.random.uniform(kb4, (out_features,),
                            minval=-b4a, maxval=b4a, dtype=jnp.float32)
    ref2 = mlp_reference(x, w3, b3, w4, b4)
    out_chunked = jax.block_until_ready(
        mlp_pallas(x, w3, b3, w4, b4, compute_dtype=jnp.float32,
                   hidden_block=128))
    assert jnp.allclose(out_chunked, ref2, atol=1e-5, rtol=1e-5), \
        "hidden-chunked path mismatch"

    print("KERNEL_OK")
</pallas_src>

<mosaic_0001>
module attributes {stable_mosaic.version = 11 : i64} {
  func.func @_mlp_kernel(%arg0: i32, %arg1: memref<16x32xf32, #tpu.memory_space<vmem>>, %arg2: memref<32x64xf32, #tpu.memory_space<vmem>>, %arg3: memref<1x64xf32, #tpu.memory_space<vmem>>, %arg4: memref<64x32xf32, #tpu.memory_space<vmem>>, %arg5: memref<1x32xf32, #tpu.memory_space<vmem>>, %arg6: memref<16x32xf32, #tpu.memory_space<vmem>>) attributes {dimension_semantics = [#tpu.dimension_semantics<parallel>], iteration_bounds = array<i64: 1>, scalar_prefetch = 0 : i64, scratch_operands = 0 : i64, tpu.core_type = #tpu.core_type<tc>, window_params = [{transform_indices = @transform_0, window_bounds = array<i64: 16, 32>}, {pipeline_mode = #tpu.pipeline_mode<synchronous>, transform_indices = @transform_1, window_bounds = array<i64: 32, 64>}, {pipeline_mode = #tpu.pipeline_mode<synchronous>, transform_indices = @transform_2, window_bounds = array<i64: 1, 64>}, {pipeline_mode = #tpu.pipeline_mode<synchronous>, transform_indices = @transform_3, window_bounds = array<i64: 64, 32>}, {pipeline_mode = #tpu.pipeline_mode<synchronous>, transform_indices = @transform_4, window_bounds = array<i64: 1, 32>}, {transform_indices = @transform_5, window_bounds = array<i64: 16, 32>}]} {
    %c0 = arith.constant 0 : index
    %c0_0 = arith.constant 0 : index
    %0 = vector.load %arg1[%c0, %c0_0] : memref<16x32xf32, #tpu.memory_space<vmem>>, vector<16x32xf32>
    %c0_1 = arith.constant 0 : index
    %c0_2 = arith.constant 0 : index
    %1 = vector.load %arg2[%c0_1, %c0_2] : memref<32x64xf32, #tpu.memory_space<vmem>>, vector<32x64xf32>
    %cst = arith.constant dense<0.000000e+00> : vector<16x64xf32>
    %2 = tpu.matmul %0, %1, %cst {dimension_numbers = #tpu.dot_dimension_numbers<[1], [0], [0], [1], [0, 0, 1, 1], [], []>} : vector<16x32xf32>, vector<32x64xf32>, vector<16x64xf32> -> vector<16x64xf32>
    %c0_3 = arith.constant 0 : index
    %c0_4 = arith.constant 0 : index
    %3 = vector.load %arg3[%c0_3, %c0_4] : memref<1x64xf32, #tpu.memory_space<vmem>>, vector<1x64xf32>
    %4 = vector.broadcast %3 : vector<1x64xf32> to vector<16x64xf32>
    %5 = arith.addf %2, %4 : vector<16x64xf32>
    %cst_5 = arith.constant 5.000000e-01 : f32
    %6 = vector.broadcast %cst_5 : f32 to vector<16x64xf32>
    %7 = arith.mulf %6, %5 : vector<16x64xf32>
    %cst_6 = arith.constant 0.707106769 : f32
    %8 = vector.broadcast %cst_6 : f32 to vector<16x64xf32>
    %9 = arith.mulf %5, %8 : vector<16x64xf32>
    %10 = math.erf %9 : vector<16x64xf32>
    %cst_7 = arith.constant 1.000000e+00 : f32
    %11 = vector.broadcast %cst_7 : f32 to vector<16x64xf32>
    %12 = arith.addf %11, %10 : vector<16x64xf32>
    %13 = arith.mulf %7, %12 : vector<16x64xf32>
    %c0_8 = arith.constant 0 : index
    %c0_9 = arith.constant 0 : index
    %14 = vector.load %arg4[%c0_8, %c0_9] : memref<64x32xf32, #tpu.memory_space<vmem>>, vector<64x32xf32>
    %cst_10 = arith.constant dense<0.000000e+00> : vector<16x32xf32>
    %15 = tpu.matmul %13, %14, %cst_10 {dimension_numbers = #tpu.dot_dimension_numbers<[1], [0], [0], [1], [0, 0, 1, 1], [], []>} : vector<16x64xf32>, vector<64x32xf32>, vector<16x32xf32> -> vector<16x32xf32>
    %c0_11 = arith.constant 0 : index
    %c0_12 = arith.constant 0 : index
    %16 = vector.load %arg5[%c0_11, %c0_12] : memref<1x32xf32, #tpu.memory_space<vmem>>, vector<1x32xf32>
    %17 = vector.broadcast %16 : vector<1x32xf32> to vector<16x32xf32>
    %18 = arith.addf %15, %17 : vector<16x32xf32>
    %c0_13 = arith.constant 0 : index
    %c0_14 = arith.constant 0 : index
    %19 = vector.load %arg6[%c0_13, %c0_14] : memref<16x32xf32, #tpu.memory_space<vmem>>, vector<16x32xf32>
    tpu.vector_store %arg6[%c0_13, %c0_14], %18 {strides = array<i32>} : memref<16x32xf32, #tpu.memory_space<vmem>>, vector<16x32xf32>,
    return
  }
  func.func @transform_0(%arg0: i32) -> (i32, i32) {
    %c0_i32 = arith.constant 0 : i32
    %c0_i32_0 = arith.constant 0 : i32
    return %arg0, %c0_i32 : i32, i32
  }
  func.func @transform_1(%arg0: i32) -> (i32, i32) {
    %c0_i32 = arith.constant 0 : i32
    %c0_i32_0 = arith.constant 0 : i32
    %c0_i32_1 = arith.constant 0 : i32
    return %c0_i32, %c0_i32_0 : i32, i32
  }
  func.func @transform_2(%arg0: i32) -> (i32, i32) {
    %c0_i32 = arith.constant 0 : i32
    %c0_i32_0 = arith.constant 0 : i32
    %c0_i32_1 = arith.constant 0 : i32
    return %c0_i32, %c0_i32_0 : i32, i32
  }
  func.func @transform_3(%arg0: i32) -> (i32, i32) {
    %c0_i32 = arith.constant 0 : i32
    %c0_i32_0 = arith.constant 0 : i32
    %c0_i32_1 = arith.constant 0 : i32
    return %c0_i32, %c0_i32_0 : i32, i32
  }
  func.func @transform_4(%arg0: i32) -> (i32, i32) {
    %c0_i32 = arith.constant 0 : i32
    %c0_i32_0 = arith.constant 0 : i32
    %c0_i32_1 = arith.constant 0 : i32
    return %c0_i32, %c0_i32_0 : i32, i32
  }
  func.func @transform_5(%arg0: i32) -> (i32, i32) {
    %c0_i32 = arith.constant 0 : i32
    %c0_i32_0 = arith.constant 0 : i32
    return %arg0, %c0_i32 : i32, i32
  }
}

module attributes {stable_mosaic.version = 11 : i64} {
  func.func @_mlp_kernel(%arg0: i32, %arg1: memref<16x32xf32, #tpu.memory_space<vmem>>, %arg2: memref<32x64xf32, #tpu.memory_space<vmem>>, %arg3: memref<1x64xf32, #tpu.memory_space<vmem>>, %arg4: memref<64x32xf32, #tpu.memory_space<vmem>>, %arg5: memref<1x32xf32, #tpu.memory_space<vmem>>, %arg6: memref<16x32xf32, #tpu.memory_space<vmem>>) attributes {dimension_semantics = [#tpu.dimension_semantics<parallel>], iteration_bounds = array<i64: 1>, scalar_prefetch = 0 : i64, scratch_operands = 0 : i64, tpu.core_type = #tpu.core_type<tc>, window_params = [{transform_indices = @transform_0, window_bounds = array<i64: 16, 32>}, {pipeline_mode = #tpu.pipeline_mode<synchronous>, transform_indices = @transform_1, window_bounds = array<i64: 32, 64>}, {pipeline_mode = #tpu.pipeline_mode<synchronous>, transform_indices = @transform_2, window_bounds = array<i64: 1, 64>}, {pipeline_mode = #tpu.pipeline_mode<synchronous>, transform_indices = @transform_3, window_bounds = array<i64: 64, 32>}, {pipeline_mode = #tpu.pipeline_mode<synchronous>, transform_indices = @transform_4, window_bounds = array<i64: 1, 32>}, {transform_indices = @transform_5, window_bounds = array<i64: 16, 32>}]} {
    %c0 = arith.constant 0 : index
    %c0_0 = arith.constant 0 : index
    %0 = vector.load %arg1[%c0, %c0_0] : memref<16x32xf32, #tpu.memory_space<vmem>>, vector<16x32xf32>
    %c0_1 = arith.constant 0 : index
    %c0_2 = arith.constant 0 : index
    %1 = vector.load %arg2[%c0_1, %c0_2] : memref<32x64xf32, #tpu.memory_space<vmem>>, vector<32x64xf32>
    %cst = arith.constant dense<0.000000e+00> : vector<16x64xf32>
    %2 = tpu.matmul %0, %1, %cst {dimension_numbers = #tpu.dot_dimension_numbers<[1], [0], [0], [1], [0, 0, 1, 1], [], []>} : vector<16x32xf32>, vector<32x64xf32>, vector<16x64xf32> -> vector<16x64xf32>
    %c0_3 = arith.constant 0 : index
    %c0_4 = arith.constant 0 : index
    %3 = vector.load %arg3[%c0_3, %c0_4] : memref<1x64xf32, #tpu.memory_space<vmem>>, vector<1x64xf32>
    %4 = vector.broadcast %3 : vector<1x64xf32> to vector<16x64xf32>
    %5 = arith.addf %2, %4 : vector<16x64xf32>
    %cst_5 = arith.constant 5.000000e-01 : f32
    %6 = vector.broadcast %cst_5 : f32 to vector<16x64xf32>
    %7 = arith.mulf %6, %5 : vector<16x64xf32>
    %cst_6 = arith.constant 0.707106769 : f32
    %8 = vector.broadcast %cst_6 : f32 to vector<16x64xf32>
    %9 = arith.mulf %5, %8 : vector<16x64xf32>
    %10 = math.erf %9 : vector<16x64xf32>
    %cst_7 = arith.constant 1.000000e+00 : f32
    %11 = vector.broadcast %cst_7 : f32 to vector<16x64xf32>
    %12 = arith.addf %11, %10 : vector<16x64xf32>
    %13 = arith.mulf %7, %12 : vector<16x64xf32>
    %c0_8 = arith.constant 0 : index
    %c0_9 = arith.constant 0 : index
    %14 = vector.load %arg4[%c0_8, %c0_9] : memref<64x32xf32, #tpu.memory_space<vmem>>, vector<64x32xf32>
    %cst_10 = arith.constant dense<0.000000e+00> : vector<16x32xf32>
    %15 = tpu.matmul %13, %14, %cst_10 {dimension_numbers = #tpu.dot_dimension_numbers<[1], [0], [0], [1], [0, 0, 1, 1], [], []>} : vector<16x64xf32>, vector<64x32xf32>, vector<16x32xf32> -> vector<16x32xf32>
    %c0_11 = arith.constant 0 : index
    %c0_12 = arith.constant 0 : index
    %16 = vector.load %arg5[%c0_11, %c0_12] : memref<1x32xf32, #tpu.memory_space<vmem>>, vector<1x32xf32>
    %17 = vector.broadcast %16 : vector<1x32xf32> to vector<16x32xf32>
    %18 = arith.addf %15, %17 : vector<16x32xf32>
    %c0_13 = arith.constant 0 : index
    %c0_14 = arith.constant 0 : index
    %19 = vector.load %arg6[%c0_13, %c0_14] : memref<16x32xf32, #tpu.memory_space<vmem>>, vector<16x32xf32>
    tpu.vector_store %arg6[%c0_13, %c0_14], %18 {strides = array<i32>} : memref<16x32xf32, #tpu.memory_space<vmem>>, vector<16x32xf32>,
    return
  }
  func.func @transform_0(%arg0: i32) -> (i32, i32) {
    %c0_i32 = arith.constant 0 : i32
    %c0_i32_0 = arith.constant 0 : i32
    return %arg0, %c0_i32 : i32, i32
  }
  func.func @transform_1(%arg0: i32) -> (i32, i32) {
    %c0_i32 = arith.constant 0 : i32
    %c0_i32_0 = arith.constant 0 : i32
    %c0_i32_1 = arith.constant 0 : i32
    return %c0_i32, %c0_i32_0 : i32, i32
  }
  func.func @transform_2(%arg0: i32) -> (i32, i32) {
    %c0_i32 = arith.constant 0 : i32
    %c0_i32_0 = arith.constant 0 : i32
    %c0_i32_1 = arith.constant 0 : i32
    return %c0_i32, %c0_i32_0 : i32, i32
  }
  func.func @transform_3(%arg0: i32) -> (i32, i32) {
    %c0_i32 = arith.constant 0 : i32
    %c0_i32_0 = arith.constant 0 : i32
    %c0_i32_1 = arith.constant 0 : i32
    return %c0_i32, %c0_i32_0 : i32, i32
  }
  func.func @transform_4(%arg0: i32) -> (i32, i32) {
    %c0_i32 = arith.constant 0 : i32
    %c0_i32_0 = arith.constant 0 : i32
    %c0_i32_1 = arith.constant 0 : i32
    return %c0_i32, %c0_i32_0 : i32, i32
  }
  func.func @transform_5(%arg0: i32) -> (i32, i32) {
    %c0_i32 = arith.constant 0 : i32
    %c0_i32_0 = arith.constant 0 : i32
    return %arg0, %c0_i32 : i32, i32
  }
}

</mosaic_0001>

<bundles_post_ra>
// kernel: tpu_custom_call.1
= control target key start
LH: loop header
LB: loop body
LE: loop exit
PB: predicated region body
PF: predicated region fallthrough
CT: control target
= control target key end

     0   :  { %vm34_vm0 = vcmask 261120   ;;  %s445_s0 = inlined_call_operand.vmem [shape: f32[16,32], index: 0, kind: input, shape index: {}]   ;;  %s446_s1 = inlined_call_operand.vmem [shape: f32[32,64], index: 1, kind: input, shape index: {}]   ;;  %s447_s2 = inlined_call_operand.vmem [shape: f32[1,64], index: 2, kind: input, shape index: {}]   ;;  %s448_s3 = inlined_call_operand.vmem [shape: f32[64,32], index: 3, kind: input, shape index: {}]   ;;  %s449_s4 = inlined_call_operand.vmem [shape: f32[1,32], index: 4, kind: input, shape index: {}]   ;;  %s450_s5 = inlined_call_operand.hbm [shape: f32[16,32], index: 5, kind: output, shape index: {}]  }
   0x1   :  { %v23_v0 = vld [vmem:[%s446_s1] sm:$0xff]  ;;  %v24_v1 = vld [vmem:[%s446_s1 + $0x8] sm:$0xff]  ;;  %v25_v2 = vld [vmem:[%s446_s1 + $0x10] sm:$0xff] }
   0x2   :  { %v293_v3 = vpack.c.bf16 %v24_v1, %v23_v0  ;;  %v26_v4 = vld [vmem:[%s446_s1 + $0x18] sm:$0xff]  ;;  %v21_v5 = vld [vmem:[%s445_s0] sm:$0xff] }
   0x3   :  { %v297_v6 = vpack.c.bf16 %v26_v4, %v25_v2  ;;  %271 = vmatprep.mubr.msk.f32.mxu0 %vm34_vm0, %v21_v5 }
   0x4   :  { %10 = vsyncpa [#allocation3], 0  ;;  %294 = vmatprep.subr.bf16.mxu0 %v293_v3  ;;  %v22_v7 = vld [vmem:[%s445_s0 + $0x8] sm:$0xff]  ;;  %v126_v8 = vld [vmem:[%s448_s3] sm:$0xff]  ;;  %vm141_vm1 = vcmask 523264   ;;  %s348_s21 = smov [#allocation2]  }
   0x5   :  { %296 = vmatpush3.bf16.msra.mxu0 %v293_v3  ;;  %v127_v9 = vld [vmem:[%s448_s3 + $0x8] sm:$0xff]  ;;  %v128_v11 = vld [vmem:[%s448_s3 + $0x10] sm:$0xff]  ;;  %v129_v12 = vld [vmem:[%s448_s3 + $0x18] sm:$0xff]  ;;  %s230_s22 = sshll.u32 %s348_s21, 4  ;;  %s231_s22 = int_to_ptr.vmem [resolvable:$true] %s230_s22 }
   0x6   :  { %298 = vmatprep.subr.bf16.mxu0 %v297_v6  ;;  %v301_v10 = vpack.c.bf16 %v127_v9, %v126_v8  ;;  %v305_v13 = vpack.c.bf16 %v129_v12, %v128_v11  ;;  %v130_v14 = vld [vmem:[%s448_s3 + $0x20] sm:$0xff]  ;;  %v131_v15 = vld [vmem:[%s448_s3 + $0x28] sm:$0xff]  ;;  %v132_v17 = vld [vmem:[%s448_s3 + $0x30] sm:$0xff]  ;;  %s324_s23 = scalar_lea.vmem %s231_s22, 256  ;;  %p329_p1 = scmp.lt.s32.totalorder %s231_s22, %s231_s22 }
   0x7   :  { %v309_v16 = vpack.c.bf16 %v131_v15, %v130_v14  ;;  %v133_v18 = vld [vmem:[%s448_s3 + $0x38] sm:$0xff]  ;;  %v241_v20 = vld [vmem:[%s447_s2] ss:$0 sm:$0xff]  ;;  %p325_p0 = scmp.ne.s32.totalorder %s231_s22, %s324_s23  ;;  %p330_p2 = scmp.lt.s32.totalorder %s324_s23, %s324_s23 }
   0x8   :  { %302 = vmatprep.subr.bf16.mxu1 %v301_v10  ;;  %v313_v19 = vpack.c.bf16 %v133_v18, %v132_v17  ;;  %v244_v35 = vld [vmem:[%s449_s4] ss:$0 sm:$0xff] }
   0x9   :  { %300 = vmatpush3.bf16.msra.mxu0 %v297_v6  ;;  %304 = vmatpush3.bf16.msra.mxu1 %v301_v10  ;;  %p331_p3 = por %p330_p2, %p329_p1 }
   0xa   :  { %306 = vmatprep.subr.bf16.mxu1 %v305_v13 }
   0xb   :  { %p332_p4 = pnand %p331_p3, %p325_p0 }
   0xc   :  { %272 = vmatmul.mubr.msk.f32.vlgmr.msra.gmra.mrb[0].mxu0 %vm34_vm0, %v22_v7 }
   0xd   :  { %308 = vmatpush3.bf16.msra.mxu1 %v305_v13 }
   0xe   :  { %310 = vmatprep.subr.bf16.mxu1 %v309_v16 }
  0x11   :  { %312 = vmatpush3.bf16.msra.mxu1 %v309_v16 }
  0x12   :  { %314 = vmatprep.subr.bf16.mxu1 %v313_v19 }
  0x15   :  { %316 = vmatpush3.bf16.msra.mxu1 %v313_v19 }
  0xdf   :  { %v273_v21 = vpop.f32.mrb[0].mxu0 }
  0xe0   :  { %v113_v22 = vadd.f32 %v273_v21, %v241_v20  ;;  %v107_v23 = vpop.f32.mrb[1].mxu0 }
  0xe1   :  { %v108_v24 = vadd.f32 %v241_v20, %v107_v23 }
  0xe2   :  { %v119_v25 = vmul.f32 0.70710677, %v113_v22  ;;  %v117_v32 = vmul.f32 0.5, %v113_v22 }
  0xe3   :  { %v118_v26 = vmul.f32 0.70710677, %v108_v24  ;;  %v116_v30 = vmul.f32 0.5, %v108_v24 }
  0xe4   :  { %320 = verf.f32 %v119_v25 }
  0xe5   :  { %322 = verf.f32 %v118_v26 }
  0xee   :  { %v321_v27 = vpop.eup %320 }
  0xef   :  { %v323_v28 = vpop.eup %322  ;;  %v123_v29 = vadd.f32 1.0, %v321_v27 }
  0xf0   :  { %v122_v31 = vadd.f32 1.0, %v323_v28 }
  0xf1   :  { %v125_v34 = vmul.f32 %v123_v29, %v117_v32 }
  0xf2   :  { %v124_v33 = vmul.f32 %v122_v31, %v116_v30 }
  0xf4   :  { %290 = vmatprep.mubr.msk.f32.mxu1 %vm141_vm1, %v124_v33 }
  0xf5   :  { %291 = vmatmul.mubr.msk.f32.vlgmr.msra.gmra.mrb[0].mxu1 %vm141_vm1, %v125_v34 }
 0x1c8   :  { %v292_v36 = vpop.f32.mrb[0].mxu1 }
 0x1c9   :  { %v220_v37 = vadd.f32 %v292_v36, %v244_v35  ;;  %v214_v38 = vpop.f32.mrb[1].mxu1 }
 0x1ca   :  { %v215_v39 = vadd.f32 %v244_v35, %v214_v38 }
 0x1cb   :  { %224 = vst.msk [vmem:[#allocation2 + $0x8] sm:$0xff] %vm34_vm0, %v220_v37 }
 0x1cc   :  { %223 = vst.msk [vmem:[#allocation2] sm:$0xff] %vm34_vm0, %v215_v39 }
 0x1cd   :  { %335 = shalt.err (!%p332_p4)
}
 0x1ce   :  { %s336_s25 = scalar_lea.hbm %s450_s5, 256 }
 0x1cf   :  { %p337_p5 = scmp.ne.s32.totalorder %s450_s5, %s336_s25  ;;  %p340_p6 = scmp.lt.u32.totalorder %s336_s25, %s450_s5 }
 0x1d1   :  { %p342_p7 = pnand %p340_p6, %p337_p5 }
 0x1d3   :  { %345 = shalt.err (!%p342_p7)
}
 0x1d4   :  { %s349_s30 = smov 128   ;;  %s350_s1 = smov 8  }
 0x1d5   :  { %236 = dma.vmem_to_hbm [thread:$0]  %s231_s22, 256, %s450_s5, [#allocation3], %s349_s30, %s349_s30, %s350_s1  }
 0x1d6   :  { %346 = dma.done.wait [#allocation3], 256  }
 0x1d7   :  { %347 = vsyncadd [#allocation3], 4294967040 }
 0x1d8   :  { %240 = vsyncpa [#allocation3], 1 }

// kernel: tpu_custom_call.1
= control target key start
LH: loop header
LB: loop body
LE: loop exit
PB: predicated region body
PF: predicated region fallthrough
CT: control target
= control target key end

     0   :  { %vm34_vm0 = vcmask 261120   ;;  %s445_s0 = inlined_call_operand.vmem [shape: f32[16,32], index: 0, kind: input, shape index: {}]   ;;  %s446_s1 = inlined_call_operand.vmem [shape: f32[32,64], index: 1, kind: input, shape index: {}]   ;;  %s447_s2 = inlined_call_operand.vmem [shape: f32[1,64], index: 2, kind: input, shape index: {}]   ;;  %s448_s3 = inlined_call_operand.vmem [shape: f32[64,32], index: 3, kind: input, shape index: {}]   ;;  %s449_s4 = inlined_call_operand.vmem [shape: f32[1,32], index: 4, kind: input, shape index: {}]   ;;  %s450_s5 = inlined_call_operand.hbm [shape: f32[16,32], index: 5, kind: output, shape index: {}]  }
   0x1   :  { %v23_v0 = vld [vmem:[%s446_s1] sm:$0xff]  ;;  %v24_v1 = vld [vmem:[%s446_s1 + $0x8] sm:$0xff]  ;;  %v25_v2 = vld [vmem:[%s446_s1 + $0x10] sm:$0xff] }
   0x2   :  { %v293_v3 = vpack.c.bf16 %v24_v1, %v23_v0  ;;  %v26_v4 = vld [vmem:[%s446_s1 + $0x18] sm:$0xff]  ;;  %v21_v5 = vld [vmem:[%s445_s0] sm:$0xff] }
   0x3   :  { %v297_v6 = vpack.c.bf16 %v26_v4, %v25_v2  ;;  %271 = vmatprep.mubr.msk.f32.mxu0 %vm34_vm0, %v21_v5 }
   0x4   :  { %10 = vsyncpa [#allocation3], 0  ;;  %294 = vmatprep.subr.bf16.mxu0 %v293_v3  ;;  %v22_v7 = vld [vmem:[%s445_s0 + $0x8] sm:$0xff]  ;;  %v126_v8 = vld [vmem:[%s448_s3] sm:$0xff]  ;;  %vm141_vm1 = vcmask 523264   ;;  %s348_s21 = smov [#allocation2]  }
   0x5   :  { %296 = vmatpush3.bf16.msra.mxu0 %v293_v3  ;;  %v127_v9 = vld [vmem:[%s448_s3 + $0x8] sm:$0xff]  ;;  %v128_v11 = vld [vmem:[%s448_s3 + $0x10] sm:$0xff]  ;;  %v129_v12 = vld [vmem:[%s448_s3 + $0x18] sm:$0xff]  ;;  %s230_s22 = sshll.u32 %s348_s21, 4  ;;  %s231_s22 = int_to_ptr.vmem [resolvable:$true] %s230_s22 }
   0x6   :  { %298 = vmatprep.subr.bf16.mxu0 %v297_v6  ;;  %v301_v10 = vpack.c.bf16 %v127_v9, %v126_v8  ;;  %v305_v13 = vpack.c.bf16 %v129_v12, %v128_v11  ;;  %v130_v14 = vld [vmem:[%s448_s3 + $0x20] sm:$0xff]  ;;  %v131_v15 = vld [vmem:[%s448_s3 + $0x28] sm:$0xff]  ;;  %v132_v17 = vld [vmem:[%s448_s3 + $0x30] sm:$0xff]  ;;  %s324_s23 = scalar_lea.vmem %s231_s22, 256  ;;  %p329_p1 = scmp.lt.s32.totalorder %s231_s22, %s231_s22 }
   0x7   :  { %v309_v16 = vpack.c.bf16 %v131_v15, %v130_v14  ;;  %v133_v18 = vld [vmem:[%s448_s3 + $0x38] sm:$0xff]  ;;  %v241_v20 = vld [vmem:[%s447_s2] ss:$0 sm:$0xff]  ;;  %p325_p0 = scmp.ne.s32.totalorder %s231_s22, %s324_s23  ;;  %p330_p2 = scmp.lt.s32.totalorder %s324_s23, %s324_s23 }
   0x8   :  { %302 = vmatprep.subr.bf16.mxu1 %v301_v10  ;;  %v313_v19 = vpack.c.bf16 %v133_v18, %v132_v17  ;;  %v244_v35 = vld [vmem:[%s449_s4] ss:$0 sm:$0xff] }
   0x9   :  { %300 = vmatpush3.bf16.msra.mxu0 %v297_v6  ;;  %304 = vmatpush3.bf16.msra.mxu1 %v301_v10  ;;  %p331_p3 = por %p330_p2, %p329_p1 }
   0xa   :  { %306 = vmatprep.subr.bf16.mxu1 %v305_v13 }
   0xb   :  { %p332_p4 = pnand %p331_p3, %p325_p0 }
   0xc   :  { %272 = vmatmul.mubr.msk.f32.vlgmr.msra.gmra.mrb[0].mxu0 %vm34_vm0, %v22_v7 }
   0xd   :  { %308 = vmatpush3.bf16.msra.mxu1 %v305_v13 }
   0xe   :  { %310 = vmatprep.subr.bf16.mxu1 %v309_v16 }
  0x11   :  { %312 = vmatpush3.bf16.msra.mxu1 %v309_v16 }
  0x12   :  { %314 = vmatprep.subr.bf16.mxu1 %v313_v19 }
  0x15   :  { %316 = vmatpush3.bf16.msra.mxu1 %v313_v19 }
  0xdf   :  { %v273_v21 = vpop.f32.mrb[0].mxu0 }
  0xe0   :  { %v113_v22 = vadd.f32 %v273_v21, %v241_v20  ;;  %v107_v23 = vpop.f32.mrb[1].mxu0 }
  0xe1   :  { %v108_v24 = vadd.f32 %v241_v20, %v107_v23 }
  0xe2   :  { %v119_v25 = vmul.f32 0.70710677, %v113_v22  ;;  %v117_v32 = vmul.f32 0.5, %v113_v22 }
  0xe3   :  { %v118_v26 = vmul.f32 0.70710677, %v108_v24  ;;  %v116_v30 = vmul.f32 0.5, %v108_v24 }
  0xe4   :  { %320 = verf.f32 %v119_v25 }
  0xe5   :  { %322 = verf.f32 %v118_v26 }
  0xee   :  { %v321_v27 = vpop.eup %320 }
  0xef   :  { %v323_v28 = vpop.eup %322  ;;  %v123_v29 = vadd.f32 1.0, %v321_v27 }
  0xf0   :  { %v122_v31 = vadd.f32 1.0, %v323_v28 }
  0xf1   :  { %v125_v34 = vmul.f32 %v123_v29, %v117_v32 }
  0xf2   :  { %v124_v33 = vmul.f32 %v122_v31, %v116_v30 }
  0xf4   :  { %290 = vmatprep.mubr.msk.f32.mxu1 %vm141_vm1, %v124_v33 }
  0xf5   :  { %291 = vmatmul.mubr.msk.f32.vlgmr.msra.gmra.mrb[0].mxu1 %vm141_vm1, %v125_v34 }
 0x1c8   :  { %v292_v36 = vpop.f32.mrb[0].mxu1 }
 0x1c9   :  { %v220_v37 = vadd.f32 %v292_v36, %v244_v35  ;;  %v214_v38 = vpop.f32.mrb[1].mxu1 }
 0x1ca   :  { %v215_v39 = vadd.f32 %v244_v35, %v214_v38 }
 0x1cb   :  { %224 = vst.msk [vmem:[#allocation2 + $0x8] sm:$0xff] %vm34_vm0, %v220_v37 }
 0x1cc   :  { %223 = vst.msk [vmem:[#allocation2] sm:$0xff] %vm34_vm0, %v215_v39 }
 0x1cd   :  { %335 = shalt.err (!%p332_p4)
}
 0x1ce   :  { %s336_s25 = scalar_lea.hbm %s450_s5, 256 }
 0x1cf   :  { %p337_p5 = scmp.ne.s32.totalorder %s450_s5, %s336_s25  ;;  %p340_p6 = scmp.lt.u32.totalorder %s336_s25, %s450_s5 }
 0x1d1   :  { %p342_p7 = pnand %p340_p6, %p337_p5 }
 0x1d3   :  { %345 = shalt.err (!%p342_p7)
}
 0x1d4   :  { %s349_s30 = smov 128   ;;  %s350_s1 = smov 8  }
 0x1d5   :  { %236 = dma.vmem_to_hbm [thread:$0]  %s231_s22, 256, %s450_s5, [#allocation3], %s349_s30, %s349_s30, %s350_s1  }
 0x1d6   :  { %346 = dma.done.wait [#allocation3], 256  }
 0x1d7   :  { %347 = vsyncadd [#allocation3], 4294967040 }
 0x1d8   :  { %240 = vsyncpa [#allocation3], 1 }

</bundles_post_ra>
